<compile_context>
chip_gen: v7x
topology: tpu7x:2x2x1
jax: 0.10.0
libtpu: 0.0.40
codegen_flags: <defaults>
</compile_context>

<pallas_src>
import functools

import jax
import jax.numpy as jnp
from jax import lax
from jax.experimental import pallas as pl
from jax.experimental.pallas import tpu as pltpu


def _round_up(a, m):
    return ((a + m - 1) // m) * m


def _vmem_limit_bytes(est_bytes):
    """Generation-aware VMEM budget: ~85% of physical (v5e/v6e 128 MiB, v7x 64 MiB)."""
    try:
        cap = pltpu.get_tpu_info().vmem_capacity_bytes
    except Exception:
        cap = 64 * 1024 * 1024
    return int(min(max(2 * est_bytes, 32 * 1024 * 1024), int(0.85 * cap)))


# ---------------------------------------------------------------------------
# Router kernel: gate matmul + f32 softmax + top-k + weight normalization.
# Runs once per token tile in its own (cold) pallas_call.
# ---------------------------------------------------------------------------
def _router_kernel(x_ref, gate_wt_ref, gate_b_ref, logits_ref, combine_ref, *,
                   expert_number, top_k, e_pad):
    tt = x_ref.shape[0]
    neg = jnp.float32(-1e30)

    logits = jnp.dot(x_ref[...], gate_wt_ref[...],
                     preferred_element_type=jnp.float32) + gate_b_ref[...]
    logits_ref[...] = logits.astype(logits_ref.dtype)      # lane-dense, input dtype

    iota_e = lax.broadcasted_iota(jnp.int32, (tt, e_pad), 1)
    valid = iota_e < expert_number
    lm = jnp.where(valid, logits, neg)
    m = jnp.max(lm, axis=-1, keepdims=True)
    p = jnp.where(valid, jnp.exp(lm - m), 0.0)
    probs = p / jnp.sum(p, axis=-1, keepdims=True)          # f32 softmax

    # top-k via iterative max + first-occurrence one-hot (matches lax.top_k ties).
    masked = jnp.where(valid, probs, neg)
    combine = jnp.zeros((tt, e_pad), jnp.float32)
    wsum = jnp.zeros((tt, 1), jnp.float32)
    for _ in range(top_k):
        mx = jnp.max(masked, axis=-1, keepdims=True)
        sel = jnp.min(jnp.where(masked == mx, iota_e, e_pad),
                      axis=-1, keepdims=True)
        onehot = (iota_e == sel).astype(jnp.float32)
        combine = combine + onehot * mx
        wsum = wsum + mx
        masked = jnp.where(onehot > 0, neg, masked)
    combine_ref[...] = combine / wsum                       # normalized routing weights


# ---------------------------------------------------------------------------
# Expert kernel: weighted accumulation of streamed expert slabs.
# Grid = (token_tile i, output-column slab n, expert slot e); e innermost.
# ---------------------------------------------------------------------------
def _expert_kernel(act_ref, cnt_ref, x_ref, w_ref, b_ref, col_ref, out_ref, acc_ref):
    del act_ref                     # only consumed by the index_maps
    i = pl.program_id(0)
    e = pl.program_id(2)

    @pl.when(e == 0)
    def _init():
        acc_ref[...] = jnp.zeros_like(acc_ref)

    # Tile-level top-k sparsity: expert slots beyond this tile's active-expert
    # count keep the previous block indices (no weight DMA) and skip all work.
    @pl.when(e < cnt_ref[i])
    def _apply():
        y = jnp.dot(x_ref[...], w_ref[...],
                    preferred_element_type=jnp.float32) + b_ref[...]
        acc_ref[...] += col_ref[...] * y        # (t_tile,1) routing weight column

    @pl.when(e == pl.num_programs(2) - 1)
    def _finalize():
        out_ref[...] = acc_ref[...].astype(out_ref.dtype)


def sparse_moe(x, gate_w, gate_b, expert_w, expert_b, top_k,
               t_tile=1024, n_tile=1024):
    """x: (B, S, H); gate_w: (E, H); gate_b: (E,);
       expert_w: (E, H, H) (torch Linear weight layout); expert_b: (E, H)."""
    B, S, H = x.shape
    E = gate_w.shape[0]
    assert top_k <= E, "top_k must not exceed expert_number"
    T = B * S
    dt = x.dtype
    isz = jnp.dtype(dt).itemsize

    # Token tiling: big MXU-friendly tiles, but keep >=2 tiles when possible so
    # both v7x TensorCores get work; multiple of 8 sublanes.
    t_tile = max(8, min(t_tile, _round_up(T, 8)))
    if T >= 16:
        t_tile = min(t_tile, _round_up(-(-T // 2), 8))
    t_tile = _round_up(t_tile, 8)
    T_pad = _round_up(T, t_tile)
    num_tiles = T_pad // t_tile

    # Output-column tiling of the expert weight (VMEM control for large H).
    n_tile = min(n_tile, H)
    if n_tile < H and (H % n_tile != 0 or n_tile % 128 != 0):
        n_tile = H
    num_n = H // n_tile

    E_pad = _round_up(E, 128)           # lane-dense gate matmul / logits store

    x_flat = x.reshape(T, H)
    if T_pad != T:
        x_flat = jnp.pad(x_flat, ((0, T_pad - T), (0, 0)))

    gate_wt_p = jnp.zeros((H, E_pad), dt).at[:, :E].set(gate_w.T.astype(dt))
    gate_b_p = jnp.zeros((1, E_pad), jnp.float32).at[0, :E].set(
        gate_b.astype(jnp.float32))

    # ---- 1) router pass (separate small pallas_call) ------------------------
    rt_tile = 256 if t_tile % 256 == 0 else t_tile
    est_r = (2 * rt_tile * H * isz + 2 * H * E_pad * isz + 2 * E_pad * 4
             + 2 * rt_tile * E_pad * isz + 2 * rt_tile * E_pad * 4
             + 8 * rt_tile * E_pad * 4)
    logits_pad, combine_pad = pl.pallas_call(
        functools.partial(_router_kernel, expert_number=E, top_k=top_k, e_pad=E_pad),
        out_shape=(jax.ShapeDtypeStruct((T_pad, E_pad), dt),
                   jax.ShapeDtypeStruct((T_pad, E_pad), jnp.float32)),
        grid_spec=pltpu.PrefetchScalarGridSpec(
            num_scalar_prefetch=0,
            grid=(T_pad // rt_tile,),
            in_specs=[
                pl.BlockSpec((rt_tile, H), lambda i: (i, 0)),
                pl.BlockSpec((H, E_pad), lambda i: (0, 0)),
                pl.BlockSpec((1, E_pad), lambda i: (0, 0)),
            ],
            out_specs=[
                pl.BlockSpec((rt_tile, E_pad), lambda i: (i, 0)),
                pl.BlockSpec((rt_tile, E_pad), lambda i: (i, 0)),
            ],
        ),
        compiler_params=pltpu.CompilerParams(
            dimension_semantics=("parallel",),
            vmem_limit_bytes=_vmem_limit_bytes(est_r),
        ),
    )(x_flat, gate_wt_p, gate_b_p)

    # ---- routing tables (plain XLA glue) ------------------------------------
    combine = combine_pad[:, :E]
    row = jnp.arange(T_pad, dtype=jnp.int32)[:, None]
    combine = jnp.where(row < T, combine, 0.0)       # padded tokens route nowhere

    ct = combine.reshape(num_tiles, t_tile, E)
    present = jnp.any(ct > 0.0, axis=1)                               # (tiles, E)
    counts = jnp.sum(present.astype(jnp.int32), axis=-1)              # (tiles,)
    eid = jnp.arange(E, dtype=jnp.int32)
    keys = jnp.where(present, eid[None, :], E).astype(jnp.int32)
    act_sorted = jnp.sort(keys, axis=-1)              # active expert ids, then E's
    last = jnp.take_along_axis(act_sorted, jnp.maximum(counts - 1, 0)[:, None],
                               axis=-1)
    last = jnp.where(counts[:, None] > 0, last, 0).astype(jnp.int32)
    active = jnp.where(eid[None, :] < counts[:, None], act_sorted, last)
    active_flat = active.astype(jnp.int32).reshape(-1)    # 1D SMEM (tiles*E,)
    counts = counts.astype(jnp.int32)

    combine_cols = combine.T.reshape(E, T_pad, 1)          # per-expert weight column

    ew_t = jnp.transpose(expert_w, (0, 2, 1)).astype(dt)   # (E, H_in, H_out)
    eb3 = expert_b.reshape(E, 1, H).astype(jnp.float32)

    # ---- 2) expert pass -------------------------------------------------------
    est = (2 * t_tile * H * isz          # x tile
           + 2 * H * n_tile * isz        # streamed expert-weight slab
           + 2 * n_tile * 4              # bias slab
           + 2 * t_tile * 128 * 4        # routing-weight column (lane-padded)
           + 2 * t_tile * n_tile * isz   # out tile
           + t_tile * n_tile * 4)        # f32 accumulator scratch

    out = pl.pallas_call(
        _expert_kernel,
        out_shape=jax.ShapeDtypeStruct((T_pad, H), dt),
        grid_spec=pltpu.PrefetchScalarGridSpec(
            num_scalar_prefetch=2,                         # active table + counts
            grid=(num_tiles, num_n, E),
            in_specs=[
                pl.BlockSpec((t_tile, H),
                             lambda i, n, e, act, cnt: (i, 0)),
                pl.BlockSpec((pl.Squeezed(), H, n_tile),
                             lambda i, n, e, act, cnt: (act[i * E + e], 0, n)),
                pl.BlockSpec((pl.Squeezed(), 1, n_tile),
                             lambda i, n, e, act, cnt: (act[i * E + e], 0, n)),
                pl.BlockSpec((pl.Squeezed(), t_tile, 1),
                             lambda i, n, e, act, cnt: (act[i * E + e], i, 0)),
            ],
            out_specs=pl.BlockSpec((t_tile, n_tile),
                                   lambda i, n, e, act, cnt: (i, n)),
            scratch_shapes=[pltpu.VMEM((t_tile, n_tile), jnp.float32)],
        ),
        compiler_params=pltpu.CompilerParams(
            dimension_semantics=("parallel", "parallel", "arbitrary"),
            vmem_limit_bytes=_vmem_limit_bytes(est),
        ),
    )(active_flat, counts, x_flat, ew_t, eb3, combine_cols)

    return out[:T].reshape(B, S, H), logits_pad[:T, :E]


def sparse_moe_reference(x, gate_w, gate_b, expert_w, expert_b, top_k):
    """Pure-JAX reference mirroring the PyTorch SparseMOE forward."""
    B, S, H = x.shape
    E = gate_w.shape[0]
    hs = x.reshape(-1, H)
    logits = hs @ gate_w.T + gate_b
    probs = jax.nn.softmax(logits.astype(jnp.float32), axis=-1)
    w, idx = lax.top_k(probs, top_k)
    w = (w / jnp.sum(w, axis=-1, keepdims=True)).astype(hs.dtype)
    combine = jnp.zeros((hs.shape[0], E), hs.dtype)
    for k in range(top_k):
        combine = combine + jax.nn.one_hot(idx[:, k], E, dtype=hs.dtype) * w[:, k:k + 1]
    out = jnp.zeros_like(hs)
    for e in range(E):
        y = hs @ expert_w[e].T + expert_b[e]
        out = out + combine[:, e:e + 1] * y
    return out.reshape(B, S, H), logits


if __name__ == "__main__":
    B, S, H, E, TOP_K = 2, 8, 32, 4, 2

    key = jax.random.PRNGKey(0)
    kx, kg, kgb, kw, kb = jax.random.split(key, 5)

    bound = 1.0 / (H ** 0.5)
    x = jax.random.normal(kx, (B, S, H), dtype=jnp.float32)
    gate_w = jax.random.uniform(kg, (E, H), jnp.float32, -bound, bound)
    gate_b = jax.random.uniform(kgb, (E,), jnp.float32, -bound, bound)
    expert_w = jax.random.uniform(kw, (E, H, H), jnp.float32, -bound, bound)
    expert_b = jax.random.uniform(kb, (E, H), jnp.float32, -bound, bound)

    out, logits = sparse_moe(x, gate_w, gate_b, expert_w, expert_b, TOP_K)
    jax.block_until_ready((out, logits))

    out_ref, logits_ref = sparse_moe_reference(x, gate_w, gate_b,
                                               expert_w, expert_b, TOP_K)
    assert jnp.allclose(out, out_ref, atol=1e-4, rtol=1e-4), "MoE output mismatch"
    assert jnp.allclose(logits, logits_ref, atol=1e-4, rtol=1e-4), "logits mismatch"

    print("KERNEL_OK")
</pallas_src>

<mosaic_0001>
module attributes {stable_mosaic.version = 11 : i64} {
  func.func @_router_kernel(%arg0: i32, %arg1: memref<8x32xf32, #tpu.memory_space<vmem>>, %arg2: memref<32x128xf32, #tpu.memory_space<vmem>>, %arg3: memref<1x128xf32, #tpu.memory_space<vmem>>, %arg4: memref<8x128xf32, #tpu.memory_space<vmem>>, %arg5: memref<8x128xf32, #tpu.memory_space<vmem>>) attributes {dimension_semantics = [#tpu.dimension_semantics<parallel>], iteration_bounds = array<i64: 2>, scalar_prefetch = 0 : i64, scratch_operands = 0 : i64, tpu.core_type = #tpu.core_type<tc>, window_params = [{transform_indices = @transform_0, window_bounds = array<i64: 8, 32>}, {pipeline_mode = #tpu.pipeline_mode<synchronous>, transform_indices = @transform_1, window_bounds = array<i64: 32, 128>}, {pipeline_mode = #tpu.pipeline_mode<synchronous>, transform_indices = @transform_2, window_bounds = array<i64: 1, 128>}, {transform_indices = @transform_3, window_bounds = array<i64: 8, 128>}, {transform_indices = @transform_4, window_bounds = array<i64: 8, 128>}]} {
    %c0 = arith.constant 0 : index
    %c0_0 = arith.constant 0 : index
    %0 = vector.load %arg1[%c0, %c0_0] : memref<8x32xf32, #tpu.memory_space<vmem>>, vector<8x32xf32>
    %c0_1 = arith.constant 0 : index
    %c0_2 = arith.constant 0 : index
    %1 = vector.load %arg2[%c0_1, %c0_2] : memref<32x128xf32, #tpu.memory_space<vmem>>, vector<32x128xf32>
    %cst = arith.constant dense<0.000000e+00> : vector<8x128xf32>
    %2 = tpu.matmul %0, %1, %cst {dimension_numbers = #tpu.dot_dimension_numbers<[1], [0], [0], [1], [0, 0, 1, 1], [], []>} : vector<8x32xf32>, vector<32x128xf32>, vector<8x128xf32> -> vector<8x128xf32>
    %c0_3 = arith.constant 0 : index
    %c0_4 = arith.constant 0 : index
    %3 = vector.load %arg3[%c0_3, %c0_4] : memref<1x128xf32, #tpu.memory_space<vmem>>, vector<1x128xf32>
    %4 = vector.broadcast %3 : vector<1x128xf32> to vector<8x128xf32>
    %5 = arith.addf %2, %4 : vector<8x128xf32>
    %c0_5 = arith.constant 0 : index
    %c0_6 = arith.constant 0 : index
    %6 = vector.load %arg4[%c0_5, %c0_6] : memref<8x128xf32, #tpu.memory_space<vmem>>, vector<8x128xf32>
    tpu.vector_store %arg4[%c0_5, %c0_6], %5 {strides = array<i32>} : memref<8x128xf32, #tpu.memory_space<vmem>>, vector<8x128xf32>,
    %7 = tpu.iota {dimensions = array<i32: 1>} : vector<8x128xi32>
    %c4_i32 = arith.constant 4 : i32
    %8 = vector.broadcast %c4_i32 : i32 to vector<8x128xi32>
    %9 = arith.cmpi slt, %7, %8 : vector<8x128xi32>
    %cst_7 = arith.constant -1.000000e+30 : f32
    %10 = vector.broadcast %cst_7 : f32 to vector<8x128xf32>
    %11 = arith.select %9, %5, %10 : vector<8x128xi1>, vector<8x128xf32>
    %cst_8 = arith.constant dense<0xFF800000> : vector<8xf32>
    %12 = vector.multi_reduction <maximumf>, %11, %cst_8 [1] : vector<8x128xf32> to vector<8xf32>
    %13 = vector.shape_cast %12 : vector<8xf32> to vector<8x1xf32>
    %14 = vector.broadcast %13 : vector<8x1xf32> to vector<8x128xf32>
    %15 = arith.subf %11, %14 : vector<8x128xf32>
    %16 = math.exp %15 : vector<8x128xf32>
    %cst_9 = arith.constant 0.000000e+00 : f32
    %17 = vector.broadcast %cst_9 : f32 to vector<8x128xf32>
    %18 = arith.select %9, %16, %17 : vector<8x128xi1>, vector<8x128xf32>
    %cst_10 = arith.constant dense<0.000000e+00> : vector<8xf32>
    %19 = vector.multi_reduction <add>, %18, %cst_10 [1] : vector<8x128xf32> to vector<8xf32>
    %20 = vector.shape_cast %19 : vector<8xf32> to vector<8x1xf32>
    %21 = vector.broadcast %20 : vector<8x1xf32> to vector<8x128xf32>
    %22 = arith.divf %18, %21 : vector<8x128xf32>
    %cst_11 = arith.constant -1.000000e+30 : f32
    %23 = vector.broadcast %cst_11 : f32 to vector<8x128xf32>
    %24 = arith.select %9, %22, %23 : vector<8x128xi1>, vector<8x128xf32>
    %cst_12 = arith.constant 0.000000e+00 : f32
    %25 = vector.broadcast %cst_12 : f32 to vector<8x128xf32>
    %cst_13 = arith.constant 0.000000e+00 : f32
    %26 = vector.broadcast %cst_13 : f32 to vector<8x1xf32>
    %cst_14 = arith.constant dense<0xFF800000> : vector<8xf32>
    %27 = vector.multi_reduction <maximumf>, %24, %cst_14 [1] : vector<8x128xf32> to vector<8xf32>
    %28 = vector.shape_cast %27 : vector<8xf32> to vector<8x1xf32>
    %29 = vector.broadcast %28 : vector<8x1xf32> to vector<8x128xf32>
    %30 = arith.cmpf oeq, %24, %29 : vector<8x128xf32>
    %c128_i32 = arith.constant 128 : i32
    %31 = vector.broadcast %c128_i32 : i32 to vector<8x128xi32>
    %32 = arith.select %30, %7, %31 : vector<8x128xi1>, vector<8x128xi32>
    %cst_15 = arith.constant dense<2147483647> : vector<8xi32>
    %33 = vector.multi_reduction <minsi>, %32, %cst_15 [1] : vector<8x128xi32> to vector<8xi32>
    %34 = vector.shape_cast %33 : vector<8xi32> to vector<8x1xi32>
    %35 = vector.broadcast %34 : vector<8x1xi32> to vector<8x128xi32>
    %36 = arith.cmpi eq, %7, %35 : vector<8x128xi32>
    %37 = arith.extui %36 : vector<8x128xi1> to vector<8x128xi32>
    %38 = arith.sitofp %37 : vector<8x128xi32> to vector<8x128xf32>
    %39 = vector.broadcast %28 : vector<8x1xf32> to vector<8x128xf32>
    %40 = arith.mulf %38, %39 : vector<8x128xf32>
    %41 = arith.addf %25, %40 : vector<8x128xf32>
    %42 = arith.addf %26, %28 : vector<8x1xf32>
    %cst_16 = arith.constant 0.000000e+00 : f32
    %43 = vector.broadcast %cst_16 : f32 to vector<8x128xf32>
    %44 = arith.cmpf ogt, %38, %43 : vector<8x128xf32>
    %cst_17 = arith.constant -1.000000e+30 : f32
    %45 = vector.broadcast %cst_17 : f32 to vector<8x128xf32>
    %46 = arith.select %44, %45, %24 : vector<8x128xi1>, vector<8x128xf32>
    %cst_18 = arith.constant dense<0xFF800000> : vector<8xf32>
    %47 = vector.multi_reduction <maximumf>, %46, %cst_18 [1] : vector<8x128xf32> to vector<8xf32>
    %48 = vector.shape_cast %47 : vector<8xf32> to vector<8x1xf32>
    %49 = vector.broadcast %48 : vector<8x1xf32> to vector<8x128xf32>
    %50 = arith.cmpf oeq, %46, %49 : vector<8x128xf32>
    %c128_i32_19 = arith.constant 128 : i32
    %51 = vector.broadcast %c128_i32_19 : i32 to vector<8x128xi32>
    %52 = arith.select %50, %7, %51 : vector<8x128xi1>, vector<8x128xi32>
    %cst_20 = arith.constant dense<2147483647> : vector<8xi32>
    %53 = vector.multi_reduction <minsi>, %52, %cst_20 [1] : vector<8x128xi32> to vector<8xi32>
    %54 = vector.shape_cast %53 : vector<8xi32> to vector<8x1xi32>
    %55 = vector.broadcast %54 : vector<8x1xi32> to vector<8x128xi32>
    %56 = arith.cmpi eq, %7, %55 : vector<8x128xi32>
    %57 = arith.extui %56 : vector<8x128xi1> to vector<8x128xi32>
    %58 = arith.sitofp %57 : vector<8x128xi32> to vector<8x128xf32>
    %59 = vector.broadcast %48 : vector<8x1xf32> to vector<8x128xf32>
    %60 = arith.mulf %58, %59 : vector<8x128xf32>
    %61 = arith.addf %41, %60 : vector<8x128xf32>
    %62 = arith.addf %42, %48 : vector<8x1xf32>
    %63 = vector.broadcast %62 : vector<8x1xf32> to vector<8x128xf32>
    %64 = arith.divf %61, %63 : vector<8x128xf32>
    %c0_21 = arith.constant 0 : index
    %c0_22 = arith.constant 0 : index
    %65 = vector.load %arg5[%c0_21, %c0_22] : memref<8x128xf32, #tpu.memory_space<vmem>>, vector<8x128xf32>
    tpu.vector_store %arg5[%c0_21, %c0_22], %64 {strides = array<i32>} : memref<8x128xf32, #tpu.memory_space<vmem>>, vector<8x128xf32>,
    return
  }
  func.func @transform_0(%arg0: i32) -> (i32, i32) {
    %c0_i32 = arith.constant 0 : i32
    %c0_i32_0 = arith.constant 0 : i32
    return %arg0, %c0_i32 : i32, i32
  }
  func.func @transform_1(%arg0: i32) -> (i32, i32) {
    %c0_i32 = arith.constant 0 : i32
    %c0_i32_0 = arith.constant 0 : i32
    %c0_i32_1 = arith.constant 0 : i32
    return %c0_i32, %c0_i32_0 : i32, i32
  }
  func.func @transform_2(%arg0: i32) -> (i32, i32) {
    %c0_i32 = arith.constant 0 : i32
    %c0_i32_0 = arith.constant 0 : i32
    %c0_i32_1 = arith.constant 0 : i32
    return %c0_i32, %c0_i32_0 : i32, i32
  }
  func.func @transform_3(%arg0: i32) -> (i32, i32) {
    %c0_i32 = arith.constant 0 : i32
    %c0_i32_0 = arith.constant 0 : i32
    return %arg0, %c0_i32 : i32, i32
  }
  func.func @transform_4(%arg0: i32) -> (i32, i32) {
    %c0_i32 = arith.constant 0 : i32
    %c0_i32_0 = arith.constant 0 : i32
    return %arg0, %c0_i32 : i32, i32
  }
}

</mosaic_0001>

<bundles_post_ra>
// kernel: tpu_custom_call.1
= control target key start
LH: loop header
LB: loop body
LE: loop exit
PB: predicated region body
PF: predicated region fallthrough
CT: control target
= control target key end

     0   :  { %10 = vsyncpa [#allocation3], 0  ;;  %s1106_s0 = inlined_call_operand.hbm [shape: f32[16,32], index: 0, kind: input, shape index: {}]   ;;  %s1107_s1 = inlined_call_operand.hbm [shape: f32[32,128], index: 1, kind: input, shape index: {}]   ;;  %s1108_s2 = inlined_call_operand.vmem [shape: f32[1,128], index: 2, kind: input, shape index: {}]   ;;  %s1109_s3 = inlined_call_operand.hbm [shape: f32[16,128], index: 3, kind: output, shape index: {0}]   ;;  %s1110_s4 = inlined_call_operand.hbm [shape: f32[16,128], index: 4, kind: output, shape index: {1}]  }
   0x1   :  { %12 = vsyncpa [#allocation3 + $0x1], 0 }
   0x2   :  { %13 = vsyncpa [#allocation6], 0 }
   0x3   :  { %14 = vsyncpa [#allocation4], 0 }
   0x4   :  { %16 = vsyncpa [#allocation4 + $0x1], 0 }
   0x5   :  { %17 = vsyncpa [#allocation9], 0 }
   0x6   :  { %19 = vsyncpa [#allocation9 + $0x1], 0  ;;  %s850_s15 = smov 0   ;;  %s852_s16 = smov 0  }
   0x7   :  { %s854_s17 = smov 0   ;;  %s856_s18 = smov 0  }
   0x8 LB: > { %s871_s19 = sadd.s32 4294967295, %s814_s18   ;;  %s538_s20 = sadd.s32 4294967294, %s814_s18   ;;  %s814_s18 = sphi %s856_s18, %s1130_s18   ;;  %s810_s17 = sphi %s854_s17, %s1129_s17   ;;  %s806_s16 = sphi %s852_s16, %s1128_s16   ;;  %s802_s15 = sphi %s850_s15, %s1127_s15  }
   0x9   : > { %p45_p0 = scmp.ne.s32.totalorder %s806_s16, %s802_s15  ;;  %p1111_p1 = scmp.eq.s32.totalorder %s871_s19, 0 }
   0xa   : > { %p117_p3 = scmp.eq.s32.totalorder %s538_s20, 1  ;;  %p539_p5 = scmp.ge.s32.totalorder %s814_s18, 1 }
   0xb   : > { %p880_p4 = por %p1111_p1, %p45_p0  ;;  %p150_p7 = scmp.lt.s32.totalorder %s814_s18, 3 }
   0xc   : > { %p885_p6 = por %p117_p3, %p45_p0  ;;  %s816_s24 = smov [#allocation5]  }
   0xd   : > { %s1114_s21 = scalar_select %p880_p4, 1, 0 }
   0xe   : > { %s1115_s22 = scalar_select %p885_p6, 1, 0 }
   0xf   : > { %p890_p8 = pnand %p539_p5, %p150_p7  ;;  %s162_s25 = sshll.u32 %s816_s24, 4  ;;  %s894_s25 = int_to_ptr.vmem [resolvable:$true] %s162_s25 }
  0x10   : > { %s906_s27 = sadd.s32 1, %s814_s18   ;;  %s32_s28 = sadd.s32 1, %s810_s17 }
  0x11   : > { %s1116_s23 = scalar_select %p890_p8, 1, 0 }
  0x12   : > { %p591_p9 = pneg %p890_p8  ;;  %s29_s29 = ssub.s32 %s814_s18, %s906_s27 }
  0x13   : > { %s654_s6 = scalar_lea.hbm %s1107_s1, 512 }
  0x14   : > { %p901_p11 = pnand %p591_p9, %p1111_p1  ;;  %p655_p12 = scmp.ne.s32.totalorder %s1107_s1, %s654_s6 }
  0x15   : > { %p661_p5 = scmp.lt.u32.totalorder %s654_s6, %s1107_s1 }
  0x16   : > { %p656_p13 = pneg %p901_p11 }
  0x18   : > { %p657_p0 = pnand %p656_p13, %p655_p12 }
  0x1a   : > { %p658_p3 = pneg %p657_p0 }
  0x1c   : > { %p663_p7 = pnand %p661_p5, %p658_p3 }
  0x1e   : > { %666 = shalt.err (!%p663_p7)
}
  0x1f   : > { %s667_s11 = scalar_lea.vmem %s894_s25, 512  ;;  %p675_p2 = scmp.lt.s32.totalorder %s894_s25, %s894_s25 }
  0x20   : > { %p668_p9 = scmp.ne.s32.totalorder %s894_s25, %s667_s11  ;;  %p676_p6 = scmp.lt.s32.totalorder %s667_s11, %s667_s11 }
  0x22   : > { %p670_p10 = pnand %p668_p9, %p656_p13  ;;  %p677_p4 = por %p676_p6, %p675_p2 }
  0x24   : > { %p671_p1 = pneg %p670_p10 }
  0x26   : > { %p678_p8 = pnand %p677_p4, %p671_p1 }
  0x28   : > { %681 = shalt.err (!%p678_p8)
}
  0x29   : > { %s817_s12 = smov 128   ;;  %s818_s13 = smov 8  }
  0x2a   : > { %594 = dma.hbm_to_vmem [thread:$0]  (!%p901_p11), %s1107_s1, 512, %s894_s25, [#allocation6], %s817_s12, %s817_s12, %s818_s13  }
  0x2b   : > { %p30_p2 = scmp.eq.s32.totalorder %s29_s29, 0  ;;  %p39_p1 = scmp.ne.s32.totalorder %s810_s17, %s806_s16 }
  0x2c   : > { %p40_p4 = scmp.eq.s32.totalorder %s814_s18, 0  ;;  %p607_p6 = scmp.lt.s32.totalorder %s814_s18, 2 }
  0x2d   : > { %s937_s24 = scalar_select %p30_p2, %s810_s17, %s32_s28  }
  0x2e   : > { %p41_p8 = por %p40_p4, %p39_p1  ;;  %p1118_p10 = scmp.eq.s32.totalorder %s871_s19, 1 }
  0x2f   : > { %s179_s5 = sand.u32 1, %s810_s17   ;;  %s543_s6 = sshll.u32 %s814_s18, 7 }
  0x30   : > { %p941_p12 = por %p1118_p10, %p39_p1  ;;  %s542_s7 = sshll.u32 %s179_s5, 3 }
  0x31   : > { %s950_s9 = scalar_lea.hbm %s1106_s0, %s543_s6  ;;  %s183_s25 = scalar_lea.vmem [#allocation2], %s542_s7 }
  0x32   : > { %s190_s28 = sshll.u32 %s183_s25, 4  ;;  %p952_p11 = pnand %p607_p6, %p41_p8  ;;  %s956_s28 = int_to_ptr.vmem [resolvable:$true] %s190_s28 }
  0x33   : > { %s180_s10 = scalar_lea.sflag [#allocation3], %s179_s5  ;;  %s682_s11 = scalar_lea.hbm %s950_s9, 128 }
  0x34   : > { %p683_p13 = scmp.ne.s32.totalorder %s950_s9, %s682_s11  ;;  %p684_p0 = pneg %p952_p11 }
  0x35   : > { %s687_s14 = scalar_lea.hbm %s1106_s0, 256  ;;  %p688_p7 = scmp.lt.u32.totalorder %s950_s9, %s1106_s0 }
  0x36   : > { %p685_p3 = pnand %p684_p0, %p683_p13  ;;  %p689_p9 = scmp.lt.u32.totalorder %s687_s14, %s682_s11 }
  0x37   : > { %p691_p1 = scmp.lt.u32.totalorder %s682_s11, %s950_s9 }
  0x38   : > { %p686_p5 = pneg %p685_p3  ;;  %p690_p2 = por %p689_p9, %p688_p7 }
  0x3a   : > { %p692_p4 = por %p691_p1, %p690_p2 }
  0x3c   : > { %p693_p6 = pnand %p692_p4, %p686_p5 }
  0x3e   : > { %696 = shalt.err (!%p693_p6)
}
  0x3f   : > { %s697_s5 = scalar_lea.vmem %s956_s28, 128  ;;  %s819_s7 = smov [#allocation2]  }
  0x40   : > { %p698_p8 = scmp.ne.s32.totalorder %s956_s28, %s697_s5  ;;  %s702_s26 = sshll.u32 %s819_s7, 4  ;;  %s703_s26 = int_to_ptr.vmem [resolvable:$false] %s702_s26 }
  0x41   : > { %s704_s8 = scalar_lea.vmem %s703_s26, 256  ;;  %p705_p3 = scmp.lt.s32.totalorder %s956_s28, %s703_s26 }
  0x42   : > { %p700_p10 = pnand %p698_p8, %p684_p0  ;;  %p706_p7 = scmp.lt.s32.totalorder %s704_s8, %s697_s5 }
  0x44   : > { %p701_p13 = pneg %p700_p10  ;;  %p707_p9 = por %p706_p7, %p705_p3 }
  0x46   : > { %p708_p2 = pnand %p707_p9, %p701_p13 }
  0x48   : > { %711 = shalt.err (!%p708_p2)
}
  0x49   : > { %598 = dma.hbm_to_vmem [thread:$0]  (!%p952_p11), %s950_s9, 128, %s956_s28, %s180_s10  }
  0x4a   : > { %p1121_p5 = scmp.ne.s32.totalorder %s1116_s23, 0 }
  0x4b   : > { %s986_s25 = sand.u32 (!%p1121_p5), 1, %s806_s16   ;;  %p1122_p0 = scmp.ne.s32.totalorder (!%p1121_p5), %s1114_s21, 0 }
  0x4c   : > { %199 = sbr.rel (%p1121_p5) target bundleno = 1528 (0x5f8), region = 32  ;;  %s989_s11 = sshll.u32 (!%p1121_p5), %s986_s25, 3 }
  0x4d   : > { %s202_s12 = scalar_lea.sflag (!%p1121_p5), [#allocation3], %s986_s25  ;;  %s205_s13 = scalar_lea.vmem (!%p1121_p5), [#allocation2], %s989_s11 }
  0x53   : > { %785 = dma.done.wait (%p1122_p0), %s202_s12, 128  }
  0x54   : > { %787 = vsyncadd (%p1122_p0), %s202_s12, 4294967168  ;;  %p1123_p11 = scmp.eq.s32.totalorder %s871_s19, 0 }
  0x56   : > { %789 = dma.done.wait (%p1123_p11), [#allocation6], 512   ;;  %p1124_p1 = pmov %p1123_p11 }
  0x57   : > { %v820_v0 = vmov 0.0|0.0   ;;  %vm821_vm0 = vmmov 0   ;;  %v822_v1 = vmov 0.0   ;;  %v240_v2 = vld [vmem:[#allocation5] sm:$0xff]  ;;  %v241_v3 = vld [vmem:[#allocation5 + $0x8] sm:$0xff]  ;;  %v242_v4 = vld [vmem:[#allocation5 + $0x10] sm:$0xff]  ;;  %v326_v9 = vlaneseq }
  0x58   : > { %791 = vsyncadd (%p1124_p1), [#allocation6], 4294966784  ;;  %575 = vmatprep.subr.bf16.mxu0 %v820_v0  ;;  %572 = vmatprep.mubr.msk.f32.mxu0 %vm821_vm0, %v822_v1  ;;  %v576_v5 = vpack.c.bf16 %v241_v3, %v240_v2  ;;  %v243_v6 = vld [vmem:[#allocation5 + $0x18] sm:$0xff]  ;;  %vm251_vm1 = vcmask 261120   ;;  %v549_v11 = vld [vmem:[%s1108_s2] ss:$0 sm:$0xff] }
  0x59   : > { %v579_v7 = vpack.c.bf16 %v243_v6, %v242_v4  ;;  %v239_v8 = vld [vmem:[%s205_s13] sm:$0xff]  ;;  %v1002_v10 = vand.u32 127, %v326_v9  ;;  %s231_s9 = scalar_lea.vmem [#allocation7], %s989_s11  ;;  %s555_s28 = sshll.u32 %s871_s19, 7 }
  0x5a   : > { %577 = vmatpush3.bf16.msra.mxu0 %v576_v5  ;;  %s1030_s14 = scalar_lea.hbm %s1109_s3, %s555_s28  ;;  %s413_s20 = sshll.u32 %s231_s9, 4  ;;  %s414_s20 = int_to_ptr.vmem [resolvable:$true] %s413_s20 }
  0x5b   : > { %578 = vmatprep.subr.bf16.mxu0 %v820_v0  ;;  %vm328_vm2 = vcmp.lt.s32.totalorder %v1002_v10, 4  ;;  %s395_s6 = scalar_lea.sflag [#allocation4], %s986_s25  ;;  %s712_s5 = scalar_lea.vmem %s414_s20, 128 }
  0x5c   : > { %p713_p4 = scmp.ne.s32.totalorder %s414_s20, %s712_s5  ;;  %s823_s7 = smov [#allocation7]  }
  0x5d   : > { %s716_s26 = sshll.u32 %s823_s7, 4  ;;  %s717_s26 = int_to_ptr.vmem [resolvable:$false] %s716_s26 }
  0x5e   : > { %580 = vmatpush3.bf16.msra.mxu0 %v579_v7  ;;  %p714_p6 = pnand %p713_p4, %p941_p12  ;;  %s718_s8 = scalar_lea.vmem %s717_s26, 256 }
  0x5f   : > { %p719_p10 = scmp.lt.s32.totalorder %s414_s20, %s717_s26  ;;  %p720_p13 = scmp.lt.s32.totalorder %s718_s8, %s712_s5 }
  0x60   : > { %p715_p8 = pneg %p714_p6 }
  0x61   : > { %573 = vmatmul.mubr.msk.f32.vlgmr.msra.gmra.mrb[0].mxu0 %vm251_vm1, %v239_v8  ;;  %p721_p3 = por %p720_p13, %p719_p10 }
  0x63   : > { %p722_p7 = pnand %p721_p3, %p715_p8 }
 0x134   : > { %v321_v12 = vpop.f32.mrb[0].mxu0 }
 0x135   : > { %v322_v13 = vadd.f32 %v549_v11, %v321_v12  ;;  %v574_v14 = vpop.f32.mrb[1].mxu0 }
 0x137   : > { %325 = vst [vmem:[%s231_s9] sm:$0xff] %v322_v13  ;;  %v329_v15 = vsel %vm328_vm2, %v322_v13, -1e+30 }
 0x138   : > { %330 = vmax.xlane.f32.xlu0 %v329_v15 }
 0x1c5   : > { %v331_v16 = vpop.xlane.xlu0 %330 }
 0x1c6   : > { %v332_v17 = vsub.f32 %v329_v15, %v331_v16 }
 0x1c8   : > { %v333_v18 = vmul.f32 1.442695, %v332_v17 }
 0x1ca   : > { %648 = vpow2.f32 %v333_v18 }
 0x1d4   : > { %v649_v19 = vpop.eup %648 }
 0x1d5   : > { %v335_v20 = vsel %vm328_vm2, %v649_v19, 0.0 }
 0x1d6   : > { %336 = vadd.xlane.f32.xlu0 %v335_v20 }
 0x263   : > { %v337_v21 = vpop.xlane.xlu0 %336 }
 0x264   : > { %650 = vrcp.f32 %v337_v21 }
 0x26e   : > { %v651_v22 = vpop.eup %650 }
 0x26f   : > { %v339_v23 = vmul.f32 %v651_v22, %v335_v20 }
 0x271   : > { %v340_v24 = vsel %vm328_vm2, %v339_v23, -1e+30 }
 0x272   : > { %341 = vmax.xlane.f32.xlu1 %v340_v24 }
 0x2ff   : > { %v1017_v25 = vpop.xlane.xlu1 %341 }
 0x300   : > { %vm343_vm3 = vcmp.eq.f32.partialorder %v340_v24, %v1017_v25 }
 0x301   : > { %v344_v26 = vsel %vm343_vm3, %v1002_v10, 128 }
 0x302   : > { %v346_v27 = vshra.s32 %v344_v26, 16  ;;  %v345_v29 = vand.u32 65535, %v344_v26 }
 0x304   : > { %v348_v28 = vcvt.s32.f32 %v346_v27  ;;  %v347_v31 = vcvt.s32.f32 %v345_v29 }
 0x306   : > { %349 = vmin.xlane.f32.xlu1 %v348_v28 }
 0x393   : > { %v350_v30 = vpop.xlane.xlu1 %349 }
 0x394   : > { %vm351_vm4 = vcmp.eq.f32.partialorder %v348_v28, %v350_v30  ;;  %v356_v33 = vcvt.f32.s32 %v350_v30 }
 0x395   : > { %v352_v32 = vsel %vm351_vm4, %v347_v31, inf }
 0x396   : > { %353 = vmin.xlane.f32.xlu0 %v352_v32  ;;  %v357_v35 = vshll.u32 %v356_v33, 16 }
 0x423   : > { %v354_v34 = vpop.xlane.xlu0 %353 }
 0x424   : > { %v355_v36 = vcvt.f32.s32 %v354_v34 }
 0x426   : > { %v358_v37 = vadd.s32 %v357_v35, %v355_v36 }
 0x428   : > { %vm359_vm5 = vcmp.eq.s32.totalorder %v1002_v10, %v358_v37 }
 0x429   : > { %v551_v38 = vsel %vm359_vm5, 1.0, %v822_v1 }
 0x42a   : > { %vm365_vm6 = vcmp.gt.f32.partialorder %v551_v38, 0.0 }
 0x42b   : > { %v366_v39 = vsel %vm365_vm6, -1e+30, %v340_v24 }
 0x42c   : > { %367 = vmax.xlane.f32.xlu1 %v366_v39 }
 0x4b9   : > { %v368_v40 = vpop.xlane.xlu1 %367 }
 0x4ba   : > { %vm369_vm7 = vcmp.eq.f32.partialorder %v366_v39, %v368_v40 }
 0x4bb   : > { %v370_v41 = vsel %vm369_vm7, %v1002_v10, 128 }
 0x4bc   : > { %v372_v42 = vshra.s32 %v370_v41, 16  ;;  %v371_v44 = vand.u32 65535, %v370_v41 }
 0x4be   : > { %v374_v43 = vcvt.s32.f32 %v372_v42  ;;  %v373_v46 = vcvt.s32.f32 %v371_v44 }
 0x4c0   : > { %375 = vmin.xlane.f32.xlu0 %v374_v43 }
 0x54d   : > { %v376_v45 = vpop.xlane.xlu0 %375 }
 0x54e   : > { %vm377_vm8 = vcmp.eq.f32.partialorder %v374_v43, %v376_v45 }
 0x54f   : > { %v378_v47 = vsel %vm377_vm8, %v373_v46, inf }
 0x550   : > { %379 = vmin.xlane.f32.xlu1 %v378_v47 }
 0x551   : > { %725 = shalt.err (!%p722_p7)
}
 0x552   : > { %s726_s12 = scalar_lea.hbm %s1030_s14, 128  ;;  %s730_s23 = scalar_lea.hbm %s1109_s3, 256 }
 0x553   : > { %p727_p9 = scmp.ne.s32.totalorder %s1030_s14, %s726_s12  ;;  %p731_p0 = scmp.lt.u32.totalorder %s1030_s14, %s1109_s3 }
 0x554   : > { %p732_p11 = scmp.lt.u32.totalorder %s730_s23, %s726_s12  ;;  %p734_p4 = scmp.lt.u32.totalorder %s726_s12, %s1030_s14 }
 0x555   : > { %p728_p2 = pnand %p727_p9, %p941_p12 }
 0x556   : > { %p733_p1 = por %p732_p11, %p731_p0 }
 0x557   : > { %p729_p5 = pneg %p728_p2 }
 0x558   : > { %p735_p6 = por %p734_p4, %p733_p1 }
 0x55a   : > { %p736_p8 = pnand %p735_p6, %p729_p5 }
 0x55c   : > { %739 = shalt.err (!%p736_p8)
}
 0x55d   : > { %587 = dma.vmem_to_hbm [thread:$0]  (%p941_p12), %s414_s20, 128, %s1030_s14, %s395_s6   ;;  %v390_v48 = vadd.f32 %v368_v40, %v1017_v25  ;;  %v382_v49 = vcvt.f32.s32 %v376_v45  ;;  %v362_v55 = vmul.f32 %v551_v38, %v1017_v25 }
 0x55e   : > { %s238_s10 = scalar_lea.vmem [#allocation8], %s989_s11  ;;  %s1062_s5 = scalar_lea.hbm %s1110_s4, %s555_s28 }
 0x55f   : > { %652 = vrcp.f32 %v390_v48  ;;  %v383_v51 = vshll.u32 %v382_v49, 16  ;;  %s426_s14 = sshll.u32 %s238_s10, 4  ;;  %s400_s7 = scalar_lea.sflag [#allocation9], %s986_s25  ;;  %s1064_s14 = int_to_ptr.vmem [resolvable:$true] %s426_s14 }
 0x560   : > { %s740_s26 = scalar_lea.vmem %s1064_s14, 128  ;;  %s824_s11 = smov [#allocation8]  }
 0x561   : > { %p741_p10 = scmp.ne.s32.totalorder %s1064_s14, %s740_s26  ;;  %s744_s8 = sshll.u32 %s824_s11, 4  ;;  %s745_s8 = int_to_ptr.vmem [resolvable:$false] %s744_s8 }
 0x562   : > { %s746_s19 = scalar_lea.vmem %s745_s8, 256  ;;  %p747_p7 = scmp.lt.s32.totalorder %s1064_s14, %s745_s8 }
 0x563   : > { %p742_p13 = pnand %p741_p10, %p941_p12  ;;  %p748_p9 = scmp.lt.s32.totalorder %s746_s19, %s740_s26 }
 0x565   : > { %p743_p3 = pneg %p742_p13  ;;  %p749_p2 = por %p748_p9, %p747_p7 }
 0x567   : > { %p750_p5 = pnand %p749_p2, %p743_p3 }
 0x569   : > { %v653_v58 = vpop.eup %652 }
 0x5dd   : > { %v380_v50 = vpop.xlane.xlu1 %379 }
 0x5de   : > { %v381_v52 = vcvt.f32.s32 %v380_v50 }
 0x5e0   : > { %v384_v53 = vadd.s32 %v383_v51, %v381_v52 }
 0x5e2   : > { %vm385_vm9 = vcmp.eq.s32.totalorder %v1002_v10, %v384_v53 }
 0x5e3   : > { %v552_v54 = vsel %vm385_vm9, 1.0, %v822_v1 }
 0x5e4   : > { %v388_v56 = vmul.f32 %v552_v54, %v368_v40 }
 0x5e6   : > { %v389_v57 = vadd.f32 %v388_v56, %v362_v55 }
 0x5e8   : > { %v392_v59 = vmul.f32 %v653_v58, %v389_v57 }
 0x5ea   : > { %393 = vst [vmem:[%s238_s10] sm:$0xff] %v392_v59 }
 0x5eb   : > { %753 = shalt.err (!%p750_p5)
}
 0x5ec   : > { %s754_s25 = scalar_lea.hbm %s1062_s5, 128  ;;  %s758_s13 = scalar_lea.hbm %s1110_s4, 256 }
 0x5ed   : > { %p755_p0 = scmp.ne.s32.totalorder %s1062_s5, %s754_s25  ;;  %p759_p4 = scmp.lt.u32.totalorder %s1062_s5, %s1110_s4 }
 0x5ee   : > { %p760_p6 = scmp.lt.u32.totalorder %s758_s13, %s754_s25  ;;  %p762_p10 = scmp.lt.u32.totalorder %s754_s25, %s1062_s5 }
 0x5ef   : > { %p756_p11 = pnand %p755_p0, %p941_p12 }
 0x5f0   : > { %p761_p8 = por %p760_p6, %p759_p4 }
 0x5f1   : > { %p757_p1 = pneg %p756_p11 }
 0x5f2   : > { %p763_p13 = por %p762_p10, %p761_p8 }
 0x5f4   : > { %p764_p3 = pnand %p763_p13, %p757_p1 }
 0x5f6   : > { %767 = shalt.err (!%p764_p3)
}
 0x5f7   : > { %588 = dma.vmem_to_hbm [thread:$0]  (%p941_p12), %s1064_s14, 128, %s1062_s5, %s400_s7  }
 0x5f8 PF: > { %s438_s9 = sand.u32 1, %s802_s15   ;;  %p1125_p7 = scmp.ne.s32.totalorder %s1115_s22, 0 }
 0x5f9   : > { %p1126_p9 = scmp.ge.s32.totalorder %s814_s18, 2  ;;  %s439_s29 = scalar_lea.sflag [#allocation4], %s438_s9 }
 0x5fb   : > { %p600_p2 = pnand %p1126_p9, %p1125_p7 }
 0x5fd   : > { %793 = dma.done.wait (!%p600_p2), %s439_s29, 128  }
 0x5fe   : > { %795 = vsyncadd (!%p600_p2), %s439_s29, 4294967168  ;;  %s448_s10 = scalar_lea.sflag [#allocation9], %s438_s9 }
 0x5ff   : > { %797 = dma.done.wait (!%p600_p2), %s448_s10, 128  }
 0x600   : > { %799 = vsyncadd (!%p600_p2), %s448_s10, 4294967168  ;;  %p22_p12 = scmp.ge.s32.totalorder %s906_s27, 4   ;;  %s1127_s15 = smov %s806_s16 }
 0x601   : > { %s1128_s16 = smov %s810_s17  ;;  %s1129_s17 = smov %s937_s24 }
 0x602   : > { %s1130_s18 = smov %s906_s27  ;;  %24 = sbr.rel (!%p22_p12) target bundleno = 8 (0x8), region = 98 }
 0x609   :  { %453 = vsyncpa [#allocation3], 1 }
 0x60a   :  { %455 = vsyncpa [#allocation3 + $0x1], 1 }
 0x60b   :  { %456 = vsyncpa [#allocation6], 1 }
 0x60c   :  { %457 = vsyncpa [#allocation4], 1 }
 0x60d   :  { %459 = vsyncpa [#allocation4 + $0x1], 1 }
 0x60e   :  { %460 = vsyncpa [#allocation9], 1 }
 0x60f   :  { %462 = vsyncpa [#allocation9 + $0x1], 1 }

</bundles_post_ra>
